<compile_context>
chip_gen: v6e
topology: v6e:2x2x1
jax: 0.10.0
libtpu: 0.0.40
codegen_flags: <defaults>
</compile_context>

<pallas_src>
from functools import partial

import jax
import jax.numpy as jnp
from jax import lax
from jax.experimental import pallas as pl
from jax.experimental.pallas import tpu as pltpu


def _round_up(x, m):
    return (x + m - 1) // m * m


def _tpu_generation():
    """Best-effort TPU generation from device_kind; safe default = 6."""
    try:
        kind = jax.devices()[0].device_kind
    except Exception:
        return 6
    for g in ("7", "6", "5", "4"):
        if g in kind:
            return int(g)
    return 6


def _chip_config():
    gen = _tpu_generation()
    if gen >= 7:     # v7x: 64 MiB VMEM / TC, 2 TCs, 256x256 MXU
        return dict(gen=gen, vmem_limit=40 * 2**20, band_budget=20 * 2**20,
                    target_rows=1024, max_tco=256, two_cores=True)
    if gen == 6:     # v6e: 128 MiB VMEM, 256x256 MXU
        return dict(gen=gen, vmem_limit=64 * 2**20, band_budget=32 * 2**20,
                    target_rows=2048, max_tco=512, two_cores=False)
    # v5e (and default): 128 MiB VMEM, 128x128 MXU
    return dict(gen=gen, vmem_limit=64 * 2**20, band_budget=32 * 2**20,
                target_rows=2048, max_tco=512, two_cores=False)


def _matmul_bias_relu_kernel(x_ref, w_ref, b_ref, o_ref):
    """o = relu(x @ w + b): single MXU dot, fp32 accumulation, bf16 store."""
    acc = jnp.dot(x_ref[...], w_ref[...], preferred_element_type=jnp.float32)
    o_ref[...] = jnp.maximum(acc + b_ref[...], 0.0).astype(o_ref.dtype)


def _choose_tile_m(mtot, k, tco, cfg):
    """Pick the M tile: as many flattened output pixels per step as VMEM allows."""

    def working_set(t):
        return (2 * t * k * 2                       # double-buffered bf16 LHS blocks
                + 2 * t * tco * 2                   # double-buffered bf16 output blocks
                + t * tco * 4                       # fp32 accumulator before the cast
                + 2 * (k * tco * 2 + tco * 4))      # resident weights + bias (x2 buffers)

    tm = max(16, min(_round_up(mtot, 16), _round_up(cfg["target_rows"], 16)))
    while tm > 16 and working_set(tm) > cfg["band_budget"]:
        tm = max(16, _round_up(tm // 2, 16))
    if working_set(tm) > cfg["vmem_limit"]:
        raise ValueError(
            "conv3x3s2_bn_relu: minimal tile still exceeds the VMEM limit; "
            "K-tiling (see TODO) is required for this problem size.")
    if cfg["two_cores"] and tm >= mtot and mtot >= 32:
        # keep >= 2 grid steps so both v7x TensorCores get work
        tm = _round_up(pl.cdiv(mtot, 2), 16)
    return tm


def conv3x3s2_bn_relu(x_nhwc, w_hwio, scale, bias, out_dtype=jnp.bfloat16):
    """Fused conv3x3 / stride2 / pad1 + frozen-BN (folded) + ReLU via one Pallas GEMM."""
    N, H, W, Cin = x_nhwc.shape
    kh, kw, _, Cout = w_hwio.shape
    assert (kh, kw) == (3, 3), "specialized for the 3x3/stride-2/pad-1 backbone stages"
    Hout = (H - 1) // 2 + 1
    Wout = (W - 1) // 2 + 1
    K = 9 * Cin
    cfg = _chip_config()

    # ---- wrapper-side packing: stride-2 im2col (2.25x replication), bf16 ----
    x = x_nhwc.astype(jnp.bfloat16)
    xpad = jnp.pad(x, ((0, 0), (1, 1), (1, 1), (0, 0)))
    cols = [xpad[:, i:i + 2 * Hout:2, j:j + 2 * Wout:2, :]
            for i in range(3) for j in range(3)]
    xt = jnp.concatenate(cols, axis=-1).reshape(N * Hout * Wout, K)
    Mtot = N * Hout * Wout

    # ---- weights: fold BN scale, reshape to (K, Cout), lane-dense padding ----
    lane_mult = 256 if (cfg["gen"] >= 6 and Cout >= 256) else 128
    Coutp = _round_up(Cout, lane_mult)
    TCO = min(Coutp, cfg["max_tco"])          # Cout grid tile (keeps weights bounded)
    Coutp = _round_up(Coutp, TCO)
    w_s = (w_hwio * scale.reshape(1, 1, 1, Cout)).reshape(K, Cout)
    wf = jnp.pad(w_s, ((0, 0), (0, Coutp - Cout))).astype(jnp.bfloat16)
    bf = jnp.pad(bias, (0, Coutp - Cout)).astype(jnp.float32).reshape(1, Coutp)

    # ---- M tiling (folds batch + rows + cols) ----
    TM = _choose_tile_m(Mtot, K, TCO, cfg)
    Mpad = _round_up(Mtot, TM)
    if Mpad != Mtot:
        xt = jnp.pad(xt, ((0, Mpad - Mtot), (0, 0)))
    R = Mpad // TM
    nco = Coutp // TCO

    flops = 2 * Mpad * K * Coutp
    bytes_accessed = (Mpad * K * 2 + K * Coutp * 2 + Coutp * 4
                      + Mpad * Coutp * jnp.dtype(out_dtype).itemsize)

    out = pl.pallas_call(
        _matmul_bias_relu_kernel,
        out_shape=jax.ShapeDtypeStruct((Mpad, Coutp), out_dtype),
        grid=(R, nco),
        in_specs=[
            pl.BlockSpec((TM, K), lambda i, j: (i, 0)),     # pipelined LHS tiles
            pl.BlockSpec((K, TCO), lambda i, j: (0, j)),    # weights stay resident per j
            pl.BlockSpec((1, TCO), lambda i, j: (0, j)),    # bias stays resident per j
        ],
        out_specs=pl.BlockSpec((TM, TCO), lambda i, j: (i, j)),
        compiler_params=pltpu.CompilerParams(
            dimension_semantics=("parallel", "parallel"),   # megacore sharding (v7x)
            vmem_limit_bytes=cfg["vmem_limit"],
        ),
        cost_estimate=pl.CostEstimate(flops=flops, transcendentals=0,
                                      bytes_accessed=bytes_accessed),
    )(xt, wf, bf)

    # Strip padded rows / channels, back to NHWC.  Output stays bf16.
    out = out[:Mtot, :Cout].reshape(N, Hout, Wout, Cout)
    return out


def init_backbone_params(key, in_channels, widths, eps=1e-5):
    """Deterministic synthetic weights for layer1..layer4 (conv + frozen BN)."""
    params = []
    c_in = in_channels
    for c_out in widths:
        key, kw_, kg, kb, km, kv = jax.random.split(key, 6)
        w = jax.random.normal(kw_, (3, 3, c_in, c_out), jnp.float32) / jnp.sqrt(9.0 * c_in)
        gamma = 1.0 + 0.1 * jax.random.normal(kg, (c_out,), jnp.float32)
        beta = 0.1 * jax.random.normal(kb, (c_out,), jnp.float32)
        mean = 0.1 * jax.random.normal(km, (c_out,), jnp.float32)
        var = 1.0 + jnp.abs(jax.random.normal(kv, (c_out,), jnp.float32))
        scale = gamma * jax.lax.rsqrt(var + eps)       # FrozenBatchNorm fold
        bias = beta - mean * scale
        params.append(dict(w=w, scale=scale, bias=bias))
        c_in = c_out
    return params


def backbone_base_forward(x_nchw, params, return_interm_layers=True):
    """Equivalent of BackboneBase.forward: dict name -> NCHW feature map (bf16)."""
    x = jnp.transpose(x_nchw, (0, 2, 3, 1))            # NCHW -> NHWC for the kernel
    names = (["0", "1", "2", "3"] if return_interm_layers
             else [None, None, None, "0"])             # IntermediateLayerGetter mapping
    outs = {}
    for li, p in enumerate(params):
        x = conv3x3s2_bn_relu(x, p["w"], p["scale"], p["bias"])
        if names[li] is not None:
            outs[names[li]] = jnp.transpose(x, (0, 3, 1, 2))   # back to NCHW
    return outs


def _reference_layer(x_nhwc, p, out_dtype=jnp.bfloat16):
    # Mirrors the kernel numerics: BN scale folded into W, bf16 operands,
    # fp32 accumulation, fp32 bias + ReLU, bf16 output.
    w_s = (p["w"] * p["scale"].reshape(1, 1, 1, -1)).astype(jnp.bfloat16)
    y = lax.conv_general_dilated(
        x_nhwc.astype(jnp.bfloat16), w_s, window_strides=(2, 2),
        padding=((1, 1), (1, 1)), dimension_numbers=("NHWC", "HWIO", "NHWC"),
        preferred_element_type=jnp.float32)
    y = jnp.maximum(y + p["bias"].reshape(1, 1, 1, -1), 0.0)
    return y.astype(out_dtype)


if __name__ == "__main__":
    key = jax.random.PRNGKey(0)
    key, kx = jax.random.split(key)

    # NCHW input, small shapes: batch=2, channels=4, spatial=16
    x = jax.random.normal(kx, (2, 4, 16, 16), jnp.float32)
    widths = (8, 16, 32, 64)   # num_channels = 64
    params = init_backbone_params(key, 4, widths)

    fwd = jax.jit(partial(backbone_base_forward, return_interm_layers=True))
    outs = jax.block_until_ready(fwd(x, params))

    # Shape checks (spatial halves each stage: 16 -> 8 -> 4 -> 2 -> 1)
    expected = {"0": (2, 8, 8, 8), "1": (2, 16, 4, 4),
                "2": (2, 32, 2, 2), "3": (2, 64, 1, 1)}
    for k_, shp in expected.items():
        assert outs[k_].shape == shp, (k_, outs[k_].shape, shp)

    # Per-layer numerical check against a plain-JAX reference with matching numerics.
    xr = jnp.transpose(x, (0, 2, 3, 1))
    for li, p in enumerate(params):
        xr = _reference_layer(xr, p)
        ref = jnp.transpose(xr, (0, 3, 1, 2)).astype(jnp.float32)
        got = outs[str(li)].astype(jnp.float32)
        assert jnp.allclose(got, ref, rtol=2.5e-2, atol=2.5e-2), (
            li, float(jnp.max(jnp.abs(got - ref))))

    print("KERNEL_OK")
</pallas_src>

<mosaic_0001>
module attributes {stable_mosaic.version = 11 : i64} {
  func.func @_matmul_bias_relu_kernel(%arg0: i32, %arg1: i32, %arg2: memref<128x36xbf16, #tpu.memory_space<vmem>>, %arg3: memref<36x128xbf16, #tpu.memory_space<vmem>>, %arg4: memref<1x128xf32, #tpu.memory_space<vmem>>, %arg5: memref<128x128xbf16, #tpu.memory_space<vmem>>) attributes {dimension_semantics = [#tpu.dimension_semantics<parallel>, #tpu.dimension_semantics<parallel>], iteration_bounds = array<i64: 1, 1>, scalar_prefetch = 0 : i64, scratch_operands = 0 : i64, tpu.core_type = #tpu.core_type<tc>, window_params = [{transform_indices = @transform_0, window_bounds = array<i64: 128, 36>}, {transform_indices = @transform_1, window_bounds = array<i64: 36, 128>}, {transform_indices = @transform_2, window_bounds = array<i64: 1, 128>}, {transform_indices = @transform_3, window_bounds = array<i64: 128, 128>}]} {
    %c0 = arith.constant 0 : index
    %c0_0 = arith.constant 0 : index
    %0 = vector.load %arg2[%c0, %c0_0] : memref<128x36xbf16, #tpu.memory_space<vmem>>, vector<128x36xbf16>
    %c0_1 = arith.constant 0 : index
    %c0_2 = arith.constant 0 : index
    %1 = vector.load %arg3[%c0_1, %c0_2] : memref<36x128xbf16, #tpu.memory_space<vmem>>, vector<36x128xbf16>
    %cst = arith.constant dense<0.000000e+00> : vector<128x128xf32>
    %2 = tpu.matmul %0, %1, %cst {dimension_numbers = #tpu.dot_dimension_numbers<[1], [0], [0], [1], [0, 0, 1, 1], [], []>} : vector<128x36xbf16>, vector<36x128xbf16>, vector<128x128xf32> -> vector<128x128xf32>
    %c0_3 = arith.constant 0 : index
    %c0_4 = arith.constant 0 : index
    %3 = vector.load %arg4[%c0_3, %c0_4] : memref<1x128xf32, #tpu.memory_space<vmem>>, vector<1x128xf32>
    %4 = vector.broadcast %3 : vector<1x128xf32> to vector<128x128xf32>
    %5 = arith.addf %2, %4 : vector<128x128xf32>
    %cst_5 = arith.constant 0.000000e+00 : f32
    %6 = vector.broadcast %cst_5 : f32 to vector<128x128xf32>
    %7 = arith.maximumf %5, %6 : vector<128x128xf32>
    %8 = arith.truncf %7 : vector<128x128xf32> to vector<128x128xbf16>
    %c0_6 = arith.constant 0 : index
    %c0_7 = arith.constant 0 : index
    %9 = vector.load %arg5[%c0_6, %c0_7] : memref<128x128xbf16, #tpu.memory_space<vmem>>, vector<128x128xbf16>
    tpu.vector_store %arg5[%c0_6, %c0_7], %8 {strides = array<i32>} : memref<128x128xbf16, #tpu.memory_space<vmem>>, vector<128x128xbf16>,
    return
  }
  func.func @transform_0(%arg0: i32, %arg1: i32) -> (i32, i32) {
    %c0_i32 = arith.constant 0 : i32
    %c0_i32_0 = arith.constant 0 : i32
    return %arg0, %c0_i32 : i32, i32
  }
  func.func @transform_1(%arg0: i32, %arg1: i32) -> (i32, i32) {
    %c0_i32 = arith.constant 0 : i32
    %c0_i32_0 = arith.constant 0 : i32
    return %c0_i32, %arg1 : i32, i32
  }
  func.func @transform_2(%arg0: i32, %arg1: i32) -> (i32, i32) {
    %c0_i32 = arith.constant 0 : i32
    %c0_i32_0 = arith.constant 0 : i32
    return %c0_i32, %arg1 : i32, i32
  }
  func.func @transform_3(%arg0: i32, %arg1: i32) -> (i32, i32) {
    %c0_i32 = arith.constant 0 : i32
    return %arg0, %arg1 : i32, i32
  }
}

module attributes {stable_mosaic.version = 11 : i64} {
  func.func @_matmul_bias_relu_kernel(%arg0: i32, %arg1: i32, %arg2: memref<32x72xbf16, #tpu.memory_space<vmem>>, %arg3: memref<72x128xbf16, #tpu.memory_space<vmem>>, %arg4: memref<1x128xf32, #tpu.memory_space<vmem>>, %arg5: memref<32x128xbf16, #tpu.memory_space<vmem>>) attributes {dimension_semantics = [#tpu.dimension_semantics<parallel>, #tpu.dimension_semantics<parallel>], iteration_bounds = array<i64: 1, 1>, scalar_prefetch = 0 : i64, scratch_operands = 0 : i64, tpu.core_type = #tpu.core_type<tc>, window_params = [{transform_indices = @transform_0, window_bounds = array<i64: 32, 72>}, {transform_indices = @transform_1, window_bounds = array<i64: 72, 128>}, {transform_indices = @transform_2, window_bounds = array<i64: 1, 128>}, {transform_indices = @transform_3, window_bounds = array<i64: 32, 128>}]} {
    %c0 = arith.constant 0 : index
    %c0_0 = arith.constant 0 : index
    %0 = vector.load %arg2[%c0, %c0_0] : memref<32x72xbf16, #tpu.memory_space<vmem>>, vector<32x72xbf16>
    %c0_1 = arith.constant 0 : index
    %c0_2 = arith.constant 0 : index
    %1 = vector.load %arg3[%c0_1, %c0_2] : memref<72x128xbf16, #tpu.memory_space<vmem>>, vector<72x128xbf16>
    %cst = arith.constant dense<0.000000e+00> : vector<32x128xf32>
    %2 = tpu.matmul %0, %1, %cst {dimension_numbers = #tpu.dot_dimension_numbers<[1], [0], [0], [1], [0, 0, 1, 1], [], []>} : vector<32x72xbf16>, vector<72x128xbf16>, vector<32x128xf32> -> vector<32x128xf32>
    %c0_3 = arith.constant 0 : index
    %c0_4 = arith.constant 0 : index
    %3 = vector.load %arg4[%c0_3, %c0_4] : memref<1x128xf32, #tpu.memory_space<vmem>>, vector<1x128xf32>
    %4 = vector.broadcast %3 : vector<1x128xf32> to vector<32x128xf32>
    %5 = arith.addf %2, %4 : vector<32x128xf32>
    %cst_5 = arith.constant 0.000000e+00 : f32
    %6 = vector.broadcast %cst_5 : f32 to vector<32x128xf32>
    %7 = arith.maximumf %5, %6 : vector<32x128xf32>
    %8 = arith.truncf %7 : vector<32x128xf32> to vector<32x128xbf16>
    %c0_6 = arith.constant 0 : index
    %c0_7 = arith.constant 0 : index
    %9 = vector.load %arg5[%c0_6, %c0_7] : memref<32x128xbf16, #tpu.memory_space<vmem>>, vector<32x128xbf16>
    tpu.vector_store %arg5[%c0_6, %c0_7], %8 {strides = array<i32>} : memref<32x128xbf16, #tpu.memory_space<vmem>>, vector<32x128xbf16>,
    return
  }
  func.func @transform_0(%arg0: i32, %arg1: i32) -> (i32, i32) {
    %c0_i32 = arith.constant 0 : i32
    %c0_i32_0 = arith.constant 0 : i32
    return %arg0, %c0_i32 : i32, i32
  }
  func.func @transform_1(%arg0: i32, %arg1: i32) -> (i32, i32) {
    %c0_i32 = arith.constant 0 : i32
    %c0_i32_0 = arith.constant 0 : i32
    return %c0_i32, %arg1 : i32, i32
  }
  func.func @transform_2(%arg0: i32, %arg1: i32) -> (i32, i32) {
    %c0_i32 = arith.constant 0 : i32
    %c0_i32_0 = arith.constant 0 : i32
    return %c0_i32, %arg1 : i32, i32
  }
  func.func @transform_3(%arg0: i32, %arg1: i32) -> (i32, i32) {
    %c0_i32 = arith.constant 0 : i32
    return %arg0, %arg1 : i32, i32
  }
}

module attributes {stable_mosaic.version = 11 : i64} {
  func.func @_matmul_bias_relu_kernel(%arg0: i32, %arg1: i32, %arg2: memref<16x144xbf16, #tpu.memory_space<vmem>>, %arg3: memref<144x128xbf16, #tpu.memory_space<vmem>>, %arg4: memref<1x128xf32, #tpu.memory_space<vmem>>, %arg5: memref<16x128xbf16, #tpu.memory_space<vmem>>) attributes {dimension_semantics = [#tpu.dimension_semantics<parallel>, #tpu.dimension_semantics<parallel>], iteration_bounds = array<i64: 1, 1>, scalar_prefetch = 0 : i64, scratch_operands = 0 : i64, tpu.core_type = #tpu.core_type<tc>, window_params = [{transform_indices = @transform_0, window_bounds = array<i64: 16, 144>}, {transform_indices = @transform_1, window_bounds = array<i64: 144, 128>}, {transform_indices = @transform_2, window_bounds = array<i64: 1, 128>}, {transform_indices = @transform_3, window_bounds = array<i64: 16, 128>}]} {
    %c0 = arith.constant 0 : index
    %c0_0 = arith.constant 0 : index
    %0 = vector.load %arg2[%c0, %c0_0] : memref<16x144xbf16, #tpu.memory_space<vmem>>, vector<16x144xbf16>
    %c0_1 = arith.constant 0 : index
    %c0_2 = arith.constant 0 : index
    %1 = vector.load %arg3[%c0_1, %c0_2] : memref<144x128xbf16, #tpu.memory_space<vmem>>, vector<144x128xbf16>
    %cst = arith.constant dense<0.000000e+00> : vector<16x128xf32>
    %2 = tpu.matmul %0, %1, %cst {dimension_numbers = #tpu.dot_dimension_numbers<[1], [0], [0], [1], [0, 0, 1, 1], [], []>} : vector<16x144xbf16>, vector<144x128xbf16>, vector<16x128xf32> -> vector<16x128xf32>
    %c0_3 = arith.constant 0 : index
    %c0_4 = arith.constant 0 : index
    %3 = vector.load %arg4[%c0_3, %c0_4] : memref<1x128xf32, #tpu.memory_space<vmem>>, vector<1x128xf32>
    %4 = vector.broadcast %3 : vector<1x128xf32> to vector<16x128xf32>
    %5 = arith.addf %2, %4 : vector<16x128xf32>
    %cst_5 = arith.constant 0.000000e+00 : f32
    %6 = vector.broadcast %cst_5 : f32 to vector<16x128xf32>
    %7 = arith.maximumf %5, %6 : vector<16x128xf32>
    %8 = arith.truncf %7 : vector<16x128xf32> to vector<16x128xbf16>
    %c0_6 = arith.constant 0 : index
    %c0_7 = arith.constant 0 : index
    %9 = vector.load %arg5[%c0_6, %c0_7] : memref<16x128xbf16, #tpu.memory_space<vmem>>, vector<16x128xbf16>
    tpu.vector_store %arg5[%c0_6, %c0_7], %8 {strides = array<i32>} : memref<16x128xbf16, #tpu.memory_space<vmem>>, vector<16x128xbf16>,
    return
  }
  func.func @transform_0(%arg0: i32, %arg1: i32) -> (i32, i32) {
    %c0_i32 = arith.constant 0 : i32
    %c0_i32_0 = arith.constant 0 : i32
    return %arg0, %c0_i32 : i32, i32
  }
  func.func @transform_1(%arg0: i32, %arg1: i32) -> (i32, i32) {
    %c0_i32 = arith.constant 0 : i32
    %c0_i32_0 = arith.constant 0 : i32
    return %c0_i32, %arg1 : i32, i32
  }
  func.func @transform_2(%arg0: i32, %arg1: i32) -> (i32, i32) {
    %c0_i32 = arith.constant 0 : i32
    %c0_i32_0 = arith.constant 0 : i32
    return %c0_i32, %arg1 : i32, i32
  }
  func.func @transform_3(%arg0: i32, %arg1: i32) -> (i32, i32) {
    %c0_i32 = arith.constant 0 : i32
    return %arg0, %arg1 : i32, i32
  }
}

module attributes {stable_mosaic.version = 11 : i64} {
  func.func @_matmul_bias_relu_kernel(%arg0: i32, %arg1: i32, %arg2: memref<16x288xbf16, #tpu.memory_space<vmem>>, %arg3: memref<288x128xbf16, #tpu.memory_space<vmem>>, %arg4: memref<1x128xf32, #tpu.memory_space<vmem>>, %arg5: memref<16x128xbf16, #tpu.memory_space<vmem>>) attributes {dimension_semantics = [#tpu.dimension_semantics<parallel>, #tpu.dimension_semantics<parallel>], iteration_bounds = array<i64: 1, 1>, scalar_prefetch = 0 : i64, scratch_operands = 0 : i64, tpu.core_type = #tpu.core_type<tc>, window_params = [{transform_indices = @transform_0, window_bounds = array<i64: 16, 288>}, {transform_indices = @transform_1, window_bounds = array<i64: 288, 128>}, {transform_indices = @transform_2, window_bounds = array<i64: 1, 128>}, {transform_indices = @transform_3, window_bounds = array<i64: 16, 128>}]} {
    %c0 = arith.constant 0 : index
    %c0_0 = arith.constant 0 : index
    %0 = vector.load %arg2[%c0, %c0_0] : memref<16x288xbf16, #tpu.memory_space<vmem>>, vector<16x288xbf16>
    %c0_1 = arith.constant 0 : index
    %c0_2 = arith.constant 0 : index
    %1 = vector.load %arg3[%c0_1, %c0_2] : memref<288x128xbf16, #tpu.memory_space<vmem>>, vector<288x128xbf16>
    %cst = arith.constant dense<0.000000e+00> : vector<16x128xf32>
    %2 = tpu.matmul %0, %1, %cst {dimension_numbers = #tpu.dot_dimension_numbers<[1], [0], [0], [1], [0, 0, 1, 1], [], []>} : vector<16x288xbf16>, vector<288x128xbf16>, vector<16x128xf32> -> vector<16x128xf32>
    %c0_3 = arith.constant 0 : index
    %c0_4 = arith.constant 0 : index
    %3 = vector.load %arg4[%c0_3, %c0_4] : memref<1x128xf32, #tpu.memory_space<vmem>>, vector<1x128xf32>
    %4 = vector.broadcast %3 : vector<1x128xf32> to vector<16x128xf32>
    %5 = arith.addf %2, %4 : vector<16x128xf32>
    %cst_5 = arith.constant 0.000000e+00 : f32
    %6 = vector.broadcast %cst_5 : f32 to vector<16x128xf32>
    %7 = arith.maximumf %5, %6 : vector<16x128xf32>
    %8 = arith.truncf %7 : vector<16x128xf32> to vector<16x128xbf16>
    %c0_6 = arith.constant 0 : index
    %c0_7 = arith.constant 0 : index
    %9 = vector.load %arg5[%c0_6, %c0_7] : memref<16x128xbf16, #tpu.memory_space<vmem>>, vector<16x128xbf16>
    tpu.vector_store %arg5[%c0_6, %c0_7], %8 {strides = array<i32>} : memref<16x128xbf16, #tpu.memory_space<vmem>>, vector<16x128xbf16>,
    return
  }
  func.func @transform_0(%arg0: i32, %arg1: i32) -> (i32, i32) {
    %c0_i32 = arith.constant 0 : i32
    %c0_i32_0 = arith.constant 0 : i32
    return %arg0, %c0_i32 : i32, i32
  }
  func.func @transform_1(%arg0: i32, %arg1: i32) -> (i32, i32) {
    %c0_i32 = arith.constant 0 : i32
    %c0_i32_0 = arith.constant 0 : i32
    return %c0_i32, %arg1 : i32, i32
  }
  func.func @transform_2(%arg0: i32, %arg1: i32) -> (i32, i32) {
    %c0_i32 = arith.constant 0 : i32
    %c0_i32_0 = arith.constant 0 : i32
    return %c0_i32, %arg1 : i32, i32
  }
  func.func @transform_3(%arg0: i32, %arg1: i32) -> (i32, i32) {
    %c0_i32 = arith.constant 0 : i32
    return %arg0, %arg1 : i32, i32
  }
}

</mosaic_0001>

<bundles_post_ra>
// kernel: backbone_base_forward.4
= control target key start
LH: loop header
LB: loop body
LE: loop exit
PB: predicated region body
PF: predicated region fallthrough
CT: control target
= control target key end

     0   :  { %vm123_vm0 = vcmask 1041408   ;;  %vm98_vm1 = vcmask 293888   ;;  %s563_s1 = inlined_call_operand.vmem [shape: bf16[36,128], index: 1, kind: input, shape index: {}]   ;;  %s564_s0 = inlined_call_operand.vmem [shape: bf16[128,36], index: 0, kind: input, shape index: {}]   ;;  %s565_s2 = inlined_call_operand.vmem [shape: f32[1,128], index: 2, kind: input, shape index: {}]   ;;  %s566_s3 = inlined_call_operand.vmem [shape: bf16[128,128], index: 3, kind: output, shape index: {}]  }
   0x1   :  { %v464_v0 = vld [vmem:[%s563_s1 + $0x10] ss:$0 sps:$4 sm:$0x33]   ;;  %v465_v1 = vld [vmem:[%s563_s1 + $0x8] sm:$0xff]   ;;  %v466_v3 = vld [vmem:[%s563_s1] sm:$0xff]  }
   0x2   :  { %462 = vmatprep.subr.msk.bf16.mxu0 %vm123_vm0, %v464_v0  ;;  %463 = vmatprep.subr.msk.bf16.mxu1 %vm123_vm0, %v464_v0  ;;  %v125_v2 = vsel %vm123_vm0, %v464_v0, 0  ;;  %v467_v4 = vld [vmem:[%s564_s0] sm:$0xff]   ;;  %v469_v6 = vld [vmem:[%s564_s0 + $0x8] sm:$0xff]   ;;  %v471_v8 = vld [vmem:[%s564_s0 + $0x10] sm:$0xff]  }
   0x3   :  { %435 = vmatpush3.bf16.msra.mxu0 %v125_v2  ;;  %459 = vmatpush3.bf16.msra.mxu1 %v125_v2  ;;  %v468_v5 = vld [vmem:[%s564_s0 + $0x20] sm:$0xff]   ;;  %v470_v7 = vld [vmem:[%s564_s0 + $0x28] sm:$0xff]   ;;  %v472_v9 = vld [vmem:[%s564_s0 + $0x30] sm:$0xff]  }
   0x4   :  { %436 = vmatprep.subr.bf16.mxu0 %v465_v1  ;;  %457 = vmatprep.subr.bf16.mxu1 %v465_v1  ;;  %v473_v10 = vld [vmem:[%s564_s0 + $0x18] sm:$0xff]   ;;  %v324_v12 = vld [vmem:[%s565_s2] ss:$0 sm:$0xff] }
   0x5   :  { %440 = vmatprep.mubr.msk.bf16.mxu0 %vm98_vm1, %v467_v4  ;;  %448 = vmatprep.mubr.msk.bf16.mxu1 %vm98_vm1, %v468_v5  ;;  %v474_v11 = vld [vmem:[%s564_s0 + $0x38] sm:$0xff]  }
   0x7   :  { %437 = vmatpush3.bf16.msra.mxu0 %v465_v1  ;;  %460 = vmatpush3.bf16.msra.mxu1 %v465_v1 }
   0x8   :  { %438 = vmatprep.subr.bf16.mxu0 %v466_v3  ;;  %458 = vmatprep.subr.bf16.mxu1 %v466_v3 }
   0xb   :  { %439 = vmatpush3.bf16.msra.mxu0 %v466_v3  ;;  %461 = vmatpush3.bf16.msra.mxu1 %v466_v3 }
   0xe   :  { %441 = vmatmul.mubr.msk.bf16.vlgmr.msra.gmra.mxu0 %vm98_vm1, %v469_v6  ;;  %449 = vmatmul.mubr.msk.bf16.vlgmr.msra.gmra.mxu1 %vm98_vm1, %v470_v7 }
   0xf   :  { %444 = vmatprep.mubr.msk.bf16.mxu0 %vm98_vm1, %v471_v8  ;;  %452 = vmatprep.mubr.msk.bf16.mxu1 %vm98_vm1, %v472_v9 }
  0x16   :  { %445 = vmatmul.mubr.msk.bf16.gmra.mxu0 %vm98_vm1, %v473_v10  ;;  %453 = vmatmul.mubr.msk.bf16.gmra.mxu1 %vm98_vm1, %v474_v11 }
  0xce   :  { %v442_v13 = vpop.f32.mrf.mxu0  ;;  %v450_v14 = vpop.f32.mrf.mxu1 }
  0xcf   :  { %v170_v15 = vadd.f32 %v442_v13, %v324_v12  ;;  %v202_v16 = vadd.f32 %v450_v14, %v324_v12 }
  0xd0   :  { %v161_v17 = vpop.f32.mrf.mxu0  ;;  %v193_v18 = vpop.f32.mrf.mxu1 }
  0xd1   :  { %v162_v19 = vadd.f32 %v324_v12, %v161_v17  ;;  %v194_v20 = vadd.f32 %v324_v12, %v193_v18  ;;  %v226_v25 = vmax.f32 %v170_v15, 0.0  ;;  %v234_v26 = vmax.f32 %v202_v16, 0.0 }
  0xd2   :  { %v443_v21 = vpop.f32.mrf.mxu0  ;;  %v451_v22 = vpop.f32.mrf.mxu1 }
  0xd3   :  { %v173_v23 = vadd.f32 %v443_v21, %v324_v12  ;;  %v205_v24 = vadd.f32 %v451_v22, %v324_v12  ;;  %v224_v33 = vmax.f32 %v162_v19, 0.0  ;;  %v232_v34 = vmax.f32 %v194_v20, 0.0 }
  0xd4   :  { %v164_v27 = vpop.f32.mrf.mxu0  ;;  %v196_v28 = vpop.f32.mrf.mxu1 }
  0xd5   :  { %v227_v29 = vmax.f32 %v173_v23, 0.0  ;;  %v235_v30 = vmax.f32 %v205_v24, 0.0  ;;  %v165_v31 = vadd.f32 %v324_v12, %v164_v27  ;;  %v197_v32 = vadd.f32 %v324_v12, %v196_v28 }
  0xd6   :  { %v446_v35 = vpop.f32.mrf.mxu0  ;;  %v454_v36 = vpop.f32.mrf.mxu1 }
  0xd7   :  { %v384_v37 = vpack.c.bf16 %v227_v29, %v226_v25  ;;  %v404_v38 = vpack.c.bf16 %v235_v30, %v234_v26  ;;  %v225_v39 = vmax.f32 %v165_v31, 0.0  ;;  %v233_v40 = vmax.f32 %v197_v32, 0.0 }
  0xd8   :  { %v186_v41 = vadd.f32 %v446_v35, %v324_v12  ;;  %v218_v42 = vadd.f32 %v454_v36, %v324_v12  ;;  %v177_v43 = vpop.f32.mrf.mxu0  ;;  %v209_v44 = vpop.f32.mrf.mxu1 }
  0xd9   :  { %416 = vst [vmem:[%s566_s3 + $0x8] sm:$0xff] %v384_v37   ;;  %420 = vst [vmem:[%s566_s3 + $0x28] sm:$0xff] %v404_v38   ;;  %v379_v45 = vpack.c.bf16 %v225_v39, %v224_v33  ;;  %v399_v46 = vpack.c.bf16 %v233_v40, %v232_v34  ;;  %v178_v47 = vadd.f32 %v324_v12, %v177_v43 }
  0xda   :  { %v210_v48 = vadd.f32 %v324_v12, %v209_v44  ;;  %v447_v49 = vpop.f32.mrf.mxu0  ;;  %v455_v50 = vpop.f32.mrf.mxu1  ;;  %v230_v53 = vmax.f32 %v186_v41, 0.0  ;;  %v238_v54 = vmax.f32 %v218_v42, 0.0 }
  0xdb   :  { %380 = vst [vmem:[%s566_s3] sm:$0xff] %v379_v45   ;;  %419 = vst [vmem:[%s566_s3 + $0x20] sm:$0xff] %v399_v46   ;;  %v189_v51 = vadd.f32 %v447_v49, %v324_v12  ;;  %v221_v52 = vadd.f32 %v455_v50, %v324_v12  ;;  %v228_v61 = vmax.f32 %v178_v47, 0.0 }
  0xdc   :  { %v180_v55 = vpop.f32.mrf.mxu0  ;;  %v212_v56 = vpop.f32.mrf.mxu1  ;;  %v236_v62 = vmax.f32 %v210_v48, 0.0 }
  0xdd   :  { %v231_v57 = vmax.f32 %v189_v51, 0.0  ;;  %v239_v58 = vmax.f32 %v221_v52, 0.0  ;;  %v181_v59 = vadd.f32 %v324_v12, %v180_v55  ;;  %v213_v60 = vadd.f32 %v324_v12, %v212_v56 }
  0xdf   :  { %v394_v63 = vpack.c.bf16 %v231_v57, %v230_v53  ;;  %v414_v0 = vpack.c.bf16 %v239_v58, %v238_v54  ;;  %v229_v1 = vmax.f32 %v181_v59, 0.0  ;;  %v237_v2 = vmax.f32 %v213_v60, 0.0 }
  0xe1   :  { %418 = vst [vmem:[%s566_s3 + $0x18] sm:$0xff] %v394_v63   ;;  %422 = vst [vmem:[%s566_s3 + $0x38] sm:$0xff] %v414_v0   ;;  %v389_v3 = vpack.c.bf16 %v229_v1, %v228_v61  ;;  %v409_v4 = vpack.c.bf16 %v237_v2, %v236_v62 }
  0xe3   :  { %417 = vst [vmem:[%s566_s3 + $0x10] sm:$0xff] %v389_v3   ;;  %421 = vst [vmem:[%s566_s3 + $0x30] sm:$0xff] %v409_v4  }

// kernel: backbone_base_forward.5
= control target key start
LH: loop header
LB: loop body
LE: loop exit
PB: predicated region body
PF: predicated region fallthrough
CT: control target
= control target key end

     0   :  { %vm79_vm0 = vcmask 1043456   ;;  %vm72_vm1 = vcmask 588800   ;;  %s268_s1 = inlined_call_operand.vmem [shape: bf16[72,128], index: 1, kind: input, shape index: {}]   ;;  %s269_s0 = inlined_call_operand.vmem [shape: bf16[32,72], index: 0, kind: input, shape index: {}]   ;;  %s270_s2 = inlined_call_operand.vmem [shape: f32[1,128], index: 2, kind: input, shape index: {}]   ;;  %s271_s3 = inlined_call_operand.vmem [shape: bf16[32,128], index: 3, kind: output, shape index: {}]  }
   0x1   :  { %v211_v0 = vld [vmem:[%s268_s1 + $0x20] ss:$0 sps:$4 sm:$0xff]   ;;  %v212_v1 = vld [vmem:[%s268_s1 + $0x18] sm:$0xff]   ;;  %v213_v3 = vld [vmem:[%s268_s1 + $0x10] sm:$0xff]  }
   0x2   :  { %210 = vmatprep.subr.msk.bf16.mxu0 %vm79_vm0, %v211_v0  ;;  %v81_v2 = vsel %vm79_vm0, %v211_v0, 0  ;;  %v216_v4 = vld [vmem:[%s269_s0] sm:$0xff]   ;;  %v214_v5 = vld [vmem:[%s268_s1 + $0x8] sm:$0xff]  }
   0x3   :  { %197 = vmatpush3.bf16.msra.mxu0 %v81_v2  ;;  %206 = vmatprep.mubr.msk.bf16.mxu0 %vm72_vm1, %v216_v4  ;;  %v215_v6 = vld [vmem:[%s268_s1] sm:$0xff]   ;;  %v217_v7 = vld [vmem:[%s269_s0 + $0x8] sm:$0xff]  }
   0x4   :  { %198 = vmatprep.subr.bf16.mxu0 %v212_v1  ;;  %v160_v9 = vld [vmem:[%s270_s2] ss:$0 sm:$0xff] }
   0x7   :  { %199 = vmatpush3.bf16.msra.mxu0 %v212_v1 }
   0x8   :  { %200 = vmatprep.subr.bf16.mxu0 %v213_v3 }
   0xb   :  { %201 = vmatpush3.bf16.msra.mxu0 %v213_v3 }
   0xc   :  { %202 = vmatprep.subr.bf16.mxu0 %v214_v5 }
   0xf   :  { %203 = vmatpush3.bf16.msra.mxu0 %v214_v5 }
  0x10   :  { %204 = vmatprep.subr.bf16.mxu0 %v215_v6 }
  0x13   :  { %205 = vmatpush3.bf16.msra.mxu0 %v215_v6 }
  0x16   :  { %207 = vmatmul.mubr.msk.bf16.vlgmr.msra.gmra.mxu0 %vm72_vm1, %v217_v7 }
  0xd6   :  { %v208_v8 = vpop.f32.mrf.mxu0 }
  0xd7   :  { %v126_v11 = vadd.f32 %v208_v8, %v160_v9 }
  0xd8   :  { %v117_v10 = vpop.f32.mrf.mxu0 }
  0xd9   :  { %v118_v13 = vadd.f32 %v160_v9, %v117_v10  ;;  %v134_v16 = vmax.f32 %v126_v11, 0.0 }
  0xda   :  { %v209_v12 = vpop.f32.mrf.mxu0 }
  0xdb   :  { %v129_v14 = vadd.f32 %v209_v12, %v160_v9  ;;  %v132_v19 = vmax.f32 %v118_v13, 0.0 }
  0xdc   :  { %v120_v15 = vpop.f32.mrf.mxu0 }
  0xdd   :  { %v135_v17 = vmax.f32 %v129_v14, 0.0  ;;  %v121_v18 = vadd.f32 %v160_v9, %v120_v15 }
  0xdf   :  { %v186_v20 = vpack.c.bf16 %v135_v17, %v134_v16  ;;  %v133_v21 = vmax.f32 %v121_v18, 0.0 }
  0xe1   :  { %188 = vst [vmem:[%s271_s3 + $0x8] sm:$0xff] %v186_v20   ;;  %v181_v22 = vpack.c.bf16 %v133_v21, %v132_v19 }
  0xe3   :  { %182 = vst [vmem:[%s271_s3] sm:$0xff] %v181_v22  }

// kernel: backbone_base_forward.6
= control target key start
LH: loop header
LB: loop body
LE: loop exit
PB: predicated region body
PF: predicated region fallthrough
CT: control target
= control target key end

     0   :  { %v201_v0 = vmov 0   ;;  %vm105_vm0 = vcmask 130048   ;;  %s261_s1 = inlined_call_operand.vmem [shape: bf16[144,128], index: 1, kind: input, shape index: {}]   ;;  %s262_s0 = inlined_call_operand.vmem [shape: bf16[16,144], index: 0, kind: input, shape index: {}]   ;;  %s263_s2 = inlined_call_operand.vmem [shape: f32[1,128], index: 2, kind: input, shape index: {}]   ;;  %s264_s3 = inlined_call_operand.vmem [shape: bf16[16,128], index: 3, kind: output, shape index: {}]  }
   0x1   :  { %109 = vmatprep.subr.bf16.mxu0 %v201_v0  ;;  %v189_v1 = vld [vmem:[%s261_s1 + $0x38] sm:$0xff]   ;;  %v190_v2 = vld [vmem:[%s261_s1 + $0x30] sm:$0xff]   ;;  %v191_v3 = vld [vmem:[%s261_s1 + $0x28] sm:$0xff]  }
   0x2   :  { %110 = vmatpush1.bf16.msra.mxu0 %v189_v1  ;;  %v192_v4 = vld [vmem:[%s261_s1 + $0x20] sm:$0xff]   ;;  %v193_v6 = vld [vmem:[%s261_s1 + $0x18] sm:$0xff]   ;;  %v194_v7 = vld [vmem:[%s261_s1 + $0x10] sm:$0xff]  }
   0x3   :  { %111 = vmatprep.subr.bf16.mxu0 %v201_v0  ;;  %v200_v5 = vld [vmem:[%s262_s0 + $0x4] ss:$8 sps:$4 sm:$0xff]   ;;  %v198_v11 = vld [vmem:[%s262_s0] ss:$8 sps:$4 sm:$0xff]  }
   0x4   :  { %178 = vmatprep.mubr.msk.bf16.mxu0 %vm105_vm0, %v200_v5  ;;  %v195_v8 = vld [vmem:[%s261_s1 + $0x8] sm:$0xff]   ;;  %v196_v9 = vld [vmem:[%s261_s1] sm:$0xff]  }
   0x5   :  { %v197_v10 = vld [vmem:[%s261_s1 + $0x40] sm:$0xff]  }
   0x6   :  { %112 = vmatpush1.bf16.msra.mxu0 %v190_v2  ;;  %v166_v12 = vld [vmem:[%s263_s2] ss:$0 sm:$0xff] }
   0x7   :  { %113 = vmatprep.subr.bf16.mxu0 %v201_v0 }
   0xa   :  { %114 = vmatpush1.bf16.msra.mxu0 %v191_v3 }
   0xb   :  { %115 = vmatprep.subr.bf16.mxu0 %v201_v0 }
   0xe   :  { %116 = vmatpush1.bf16.msra.mxu0 %v192_v4 }
   0xf   :  { %117 = vmatprep.subr.bf16.mxu0 %v201_v0 }
  0x12   :  { %118 = vmatpush1.bf16.msra.mxu0 %v193_v6 }
  0x13   :  { %119 = vmatprep.subr.bf16.mxu0 %v201_v0 }
  0x16   :  { %120 = vmatpush1.bf16.msra.mxu0 %v194_v7 }
  0x17   :  { %121 = vmatprep.subr.bf16.mxu0 %v201_v0 }
  0x1a   :  { %122 = vmatpush1.bf16.msra.mxu0 %v195_v8 }
  0x1b   :  { %123 = vmatprep.subr.bf16.mxu0 %v201_v0 }
  0x1e   :  { %124 = vmatpush1.bf16.msra.mxu0 %v196_v9 }
  0x1f   :  { %139 = vmatprep.subr.bf16.mxu0 %v201_v0 }
  0x22   :  { %140 = vmatpush2.bf16.msra.mxu0 %v197_v10 }
  0x25   :  { %142 = vmatmul.mubr.bf16.vlgmr.msra.gmra.mxu0 %v198_v11 }
  0xe5   :  { %v143_v13 = vpop.f32.mrf.mxu0 }
  0xe6   :  { %v144_v15 = vadd.f32 %v166_v12, %v143_v13 }
  0xe7   :  { %v145_v14 = vpop.f32.mrf.mxu0 }
  0xe8   :  { %v150_v19 = vmax.f32 %v144_v15, 0.0 }
  0xe9   :  { %v146_v16 = vpop.f32.mrf.mxu0 }
  0xea   :  { %v147_v17 = vadd.f32 %v166_v12, %v146_v16 }
  0xeb   :  { %v148_v18 = vpop.f32.mrf.mxu0 }
  0xec   :  { %v151_v20 = vmax.f32 %v147_v17, 0.0 }
  0xee   :  { %v186_v21 = vpack.c.bf16 %v151_v20, %v150_v19 }
  0xf0   :  { %187 = vst [vmem:[%s264_s3] sm:$0xff] %v186_v21  }

// kernel: backbone_base_forward.7
= control target key start
LH: loop header
LB: loop body
LE: loop exit
PB: predicated region body
PF: predicated region fallthrough
CT: control target
= control target key end

     0   :  { %v376_v1 = vmov 0.0   ;;  %vm377_vm0 = vmmov 0   ;;  %vm185_vm1 = vcmask 261120   ;;  %s467_s1 = inlined_call_operand.vmem [shape: bf16[288,128], index: 1, kind: input, shape index: {}]   ;;  %s468_s0 = inlined_call_operand.vmem [shape: bf16[16,288], index: 0, kind: input, shape index: {}]   ;;  %s469_s2 = inlined_call_operand.vmem [shape: f32[1,128], index: 2, kind: input, shape index: {}]   ;;  %s470_s3 = inlined_call_operand.vmem [shape: bf16[16,128], index: 3, kind: output, shape index: {}]  }
   0x1   :  { %v354_v0 = vld [vmem:[%s467_s1 + $0x78] sm:$0xff]   ;;  %344 = vmatprep.subr.bf16.mxu1 %v376_v1  ;;  %348 = vmatprep.mubr.msk.bf16.mxu1 %vm377_vm0, %v376_v1  ;;  %v356_v3 = vld [vmem:[%s467_s1 + $0x70] sm:$0xff]   ;;  %v358_v5 = vld [vmem:[%s467_s1 + $0x68] sm:$0xff]  }
   0x2   :  { %v355_v2 = vld [vmem:[%s467_s1 + $0x38] sm:$0xff]   ;;  %319 = vmatprep.subr.bf16.mxu0 %v354_v0  ;;  %v357_v4 = vld [vmem:[%s467_s1 + $0x30] sm:$0xff]   ;;  %v359_v6 = vld [vmem:[%s467_s1 + $0x28] sm:$0xff]  }
   0x3   :  { %320 = vmatpush3.bf16.msra.mxu0 %v355_v2  ;;  %v360_v7 = vld [vmem:[%s467_s1 + $0x60] sm:$0xff]   ;;  %v362_v9 = vld [vmem:[%s467_s1 + $0x58] sm:$0xff]   ;;  %v368_v10 = vld [vmem:[%s467_s1 + $0x88] sm:$0xff]  }
   0x4   :  { %321 = vmatprep.subr.bf16.mxu0 %v356_v3  ;;  %v361_v8 = vld [vmem:[%s467_s1 + $0x20] sm:$0xff]   ;;  %v363_v11 = vld [vmem:[%s467_s1 + $0x18] sm:$0xff]   ;;  %v364_v12 = vld [vmem:[%s467_s1 + $0x50] sm:$0xff]   ;;  %345 = vmatpush3.bf16.msra.mxu1 %v368_v10 }
   0x5   :  { %346 = vmatprep.subr.bf16.mxu1 %v376_v1  ;;  %v371_v13 = vld [vmem:[%s467_s1 + $0x80] sm:$0xff]   ;;  %v365_v14 = vld [vmem:[%s467_s1 + $0x10] sm:$0xff]   ;;  %v366_v16 = vld [vmem:[%s467_s1 + $0x48] sm:$0xff]  }
   0x6   :  { %v374_v15 = vld [vmem:[%s468_s0 + $0x4] ss:$12 sps:$4 sm:$0xff]   ;;  %v375_v17 = vld [vmem:[%s468_s0 + $0x8] ss:$12 sps:$4 sm:$0xff]   ;;  %v372_v21 = vld [vmem:[%s468_s0] ss:$12 sps:$4 sm:$0xff]  }
   0x7   :  { %322 = vmatpush3.bf16.msra.mxu0 %v357_v4  ;;  %221 = vmatprep.mubr.bf16.mxu0 %v374_v15  ;;  %v367_v18 = vld [vmem:[%s467_s1 + $0x8] sm:$0xff]   ;;  %v369_v19 = vld [vmem:[%s467_s1 + $0x40] sm:$0xff]  }
   0x8   :  { %323 = vmatprep.subr.bf16.mxu0 %v358_v5  ;;  %347 = vmatpush3.bf16.msra.mxu1 %v371_v13  ;;  %v370_v20 = vld [vmem:[%s467_s1] sm:$0xff]  }
   0x9   :  { %v287_v27 = vld [vmem:[%s469_s2] ss:$0 sm:$0xff] }
   0xb   :  { %324 = vmatpush3.bf16.msra.mxu0 %v359_v6  ;;  %349 = vmatmul.mubr.msk.bf16.vlgmr.msra.gmra.mxu1 %vm185_vm1, %v375_v17 }
   0xc   :  { %325 = vmatprep.subr.bf16.mxu0 %v360_v7 }
   0xf   :  { %326 = vmatpush3.bf16.msra.mxu0 %v361_v8 }
  0x10   :  { %327 = vmatprep.subr.bf16.mxu0 %v362_v9 }
  0x13   :  { %328 = vmatpush3.bf16.msra.mxu0 %v363_v11 }
  0x14   :  { %329 = vmatprep.subr.bf16.mxu0 %v364_v12 }
  0x17   :  { %330 = vmatpush3.bf16.msra.mxu0 %v365_v14 }
  0x18   :  { %331 = vmatprep.subr.bf16.mxu0 %v366_v16 }
  0x1b   :  { %332 = vmatpush3.bf16.msra.mxu0 %v367_v18 }
  0x1c   :  { %333 = vmatprep.subr.bf16.mxu0 %v369_v19 }
  0x1f   :  { %334 = vmatpush3.bf16.msra.mxu0 %v370_v20 }
  0x22   :  { %222 = vmatmul.mubr.bf16.vlgmr.msra.gmra.mxu0 %v372_v21 }
  0xcb   :  { %v264_v22 = vpop.f32.mrf.mxu1 }
  0xcd   :  { %v350_v23 = vpop.f32.mrf.mxu1 }
  0xcf   :  { %v267_v24 = vpop.f32.mrf.mxu1 }
  0xd1   :  { %v351_v25 = vpop.f32.mrf.mxu1 }
  0xe2   :  { %v335_v26 = vpop.f32.mrf.mxu0 }
  0xe4   :  { %v336_v28 = vpop.f32.mrf.mxu0 }
  0xe5   :  { %v337_v29 = vadd.f32 %v336_v28, %v335_v26 }
  0xe6   :  { %v338_v30 = vpop.f32.mrf.mxu0 }
  0xe7   :  { %v224_v31 = vadd.f32 %v337_v29, %v287_v27 }
  0xe8   :  { %v339_v32 = vpop.f32.mrf.mxu0 }
  0xe9   :  { %v340_v33 = vadd.f32 %v339_v32, %v338_v30  ;;  %v265_v34 = vadd.f32 %v264_v22, %v224_v31 }
  0xeb   :  { %v227_v35 = vadd.f32 %v340_v33, %v287_v27  ;;  %v271_v37 = vmax.f32 %v265_v34, 0.0 }
  0xed   :  { %v268_v36 = vadd.f32 %v267_v24, %v227_v35 }
  0xef   :  { %v272_v38 = vmax.f32 %v268_v36, 0.0 }
  0xf1   :  { %v317_v39 = vpack.c.bf16 %v272_v38, %v271_v37 }
  0xf3   :  { %318 = vst [vmem:[%s470_s3] sm:$0xff] %v317_v39  }

</bundles_post_ra>
